<compile_context>
chip_gen: v6e
topology: v6e:2x2x1
jax: 0.10.0
libtpu: 0.0.40
codegen_flags: <defaults>
</compile_context>

<pallas_src>
import inspect

import jax
import jax.numpy as jnp
from jax.experimental import pallas as pl
from jax.experimental.pallas import tpu as pltpu

_LANE = 128
_TARGET_BLOCK_BYTES = 4 * 1024 * 1024   # ~4 MiB streamed per grid step
_DIRECT_LIMIT_BYTES = 2 * 1024 * 1024   # larger slabs go through the pipeline
_MIN_BLOCKS = 4                         # keep >=4 blocks so DMA/compute overlap
_VMEM_LIMIT_BYTES = 32 * 1024 * 1024    # fits v5e/v6e/v7x scoped budgets

try:
    _HAS_PIPELINE_MODE = (
        hasattr(pl, "Buffered")
        and "pipeline_mode" in inspect.signature(pl.BlockSpec).parameters)
except (TypeError, ValueError):  # pragma: no cover - defensive only
    _HAS_PIPELINE_MODE = False


# --------------------------------------------------------------------------
# Direct (single-block) path: whole slab resident in VMEM (<= 2 MiB inputs).
# --------------------------------------------------------------------------
def _direct_kernel(x_ref, min_ref, max_ref):
    # TODO(synk): integer inputs go through f32 here (|v| > 2^24 may round).
    x = x_ref[...].astype(jnp.float32)
    min_ref[...] = jnp.min(x, keepdims=True)
    max_ref[...] = jnp.max(x, keepdims=True)


def _direct_min_max(slab):
    rows, cols = slab.shape
    min_out, max_out = pl.pallas_call(
        _direct_kernel,
        out_shape=(jax.ShapeDtypeStruct((1, 1), jnp.float32),
                   jax.ShapeDtypeStruct((1, 1), jnp.float32)),
        grid_spec=pltpu.PrefetchScalarGridSpec(
            num_scalar_prefetch=0,
            grid=(1,),
            in_specs=[pl.BlockSpec((rows, cols), lambda i: (0, 0))],
            out_specs=[pl.BlockSpec((1, 1), lambda i: (0, 0)),
                       pl.BlockSpec((1, 1), lambda i: (0, 0))],
            scratch_shapes=[],
        ),
        compiler_params=pltpu.CompilerParams(
            dimension_semantics=("arbitrary",),
            vmem_limit_bytes=_VMEM_LIMIT_BYTES,
        ),
        cost_estimate=pl.CostEstimate(
            flops=2 * rows * cols,
            transcendentals=0,
            bytes_accessed=rows * cols * slab.dtype.itemsize + 8,
        ),
    )(slab)
    return min_out[0, 0], max_out[0, 0]


# --------------------------------------------------------------------------
# Tiled / pipelined path with dual-TensorCore split.
# --------------------------------------------------------------------------
def _make_tiled_kernel(block_rows, rows, n_blocks, n_per_core,
                       acc_dtype, group_rows):
    """Reduce a (rows, 128) slab; grid = (2 cores, n_per_core blocks/core).

    Hot loop is pure VPU elementwise min/max into a (group_rows, 128) VMEM
    accumulator per core; the ragged tail (and any duplicated, clamped block)
    is masked with +/-inf; the accumulator is stored once on the last step.
    """
    groups = block_rows // group_rows
    # Mask needed iff the 2 * n_per_core * block_rows cover exceeds the real
    # row count (ragged last block and/or odd block count -> duplicate block).
    needs_mask = (2 * n_per_core * block_rows) > rows

    def kernel(x_ref, min_ref, max_ref, min_acc, max_acc):
        c = pl.program_id(0)          # TensorCore split ("parallel")
        i = pl.program_id(1)          # reduction steps ("arbitrary")
        last = pl.num_programs(1) - 1

        @pl.when(i == 0)
        def _init():
            min_acc[...] = jnp.full((group_rows, _LANE), jnp.inf, acc_dtype)
            max_acc[...] = jnp.full((group_rows, _LANE), -jnp.inf, acc_dtype)

        # bf16 stays bf16 (native VALU on v6e/v7x); everything else -> f32.
        x = x_ref[...].astype(acc_dtype)

        def accumulate(x_min, x_max):
            # (block_rows,128) -> (groups, group_rows, 128); reducing the
            # leading dim is elementwise vreg min/max (VPU only, no XLU).
            min_acc[...] = jnp.minimum(
                min_acc[...],
                jnp.min(x_min.reshape(groups, group_rows, _LANE), axis=0))
            max_acc[...] = jnp.maximum(
                max_acc[...],
                jnp.max(x_max.reshape(groups, group_rows, _LANE), axis=0))

        if needs_mask:
            g = c * n_per_core + i            # logical (unclamped) block index
            start = g * block_rows
            is_full = (start + block_rows) <= rows

            @pl.when(is_full)
            def _full_block():
                accumulate(x, x)

            @pl.when(jnp.logical_not(is_full))
            def _ragged_block():
                # valid <= 0 for duplicated (clamped) blocks -> fully masked.
                # NOTE: full-block iota/where runs once per core; cost is a
                # one-time VALU bump, negligible vs. the HBM stream.
                valid = rows - start
                row_ids = jax.lax.broadcasted_iota(
                    jnp.int32, (block_rows, _LANE), 0)
                mask = row_ids < valid
                pos = jnp.asarray(jnp.inf, acc_dtype)
                neg = jnp.asarray(-jnp.inf, acc_dtype)
                accumulate(jnp.where(mask, x, pos), jnp.where(mask, x, neg))
        else:
            accumulate(x, x)

        @pl.when(i == last)
        def _finalize():
            # Store the lane-dense per-core partial; cross-lane reduce of the
            # tiny (2*group_rows, 128) result happens in the wrapper.
            min_ref[...] = min_acc[...].astype(jnp.float32)
            max_ref[...] = max_acc[...].astype(jnp.float32)

    return kernel


def _tiled_min_max(slab):
    rows, _ = slab.shape
    itemsize = slab.dtype.itemsize

    if slab.dtype == jnp.bfloat16:
        acc_dtype, group_rows = jnp.bfloat16, 16
    else:
        # TODO(synk): integer inputs use an f32 accumulator (|v| > 2^24 may
        # round); add an integer accumulator branch if int observers matter.
        acc_dtype, group_rows = jnp.float32, 8

    # Size blocks to ~4 MiB of streamed data (guarding against widening).
    sizing_itemsize = max(itemsize, jnp.dtype(acc_dtype).itemsize // 2 * 2)
    max_rows = max(16, (_TARGET_BLOCK_BYTES // (_LANE * sizing_itemsize))
                   // 16 * 16)
    min_split = -(-rows // _MIN_BLOCKS)          # cdiv
    min_split = -(-min_split // 16) * 16          # round up to multiple of 16
    block_rows = max(16, min(max_rows, min_split))

    n_blocks = pl.cdiv(rows, block_rows)
    n_per_core = pl.cdiv(n_blocks, 2)
    grid = (2, n_per_core)

    kernel = _make_tiled_kernel(block_rows, rows, n_blocks, n_per_core,
                                acc_dtype, group_rows)

    def in_map(c, i):
        # Clamp so an odd block count re-reads (and fully masks) the last
        # real block instead of running off the end of the array.
        return (jnp.minimum(c * n_per_core + i, n_blocks - 1), 0)

    spec_kwargs = {}
    if _HAS_PIPELINE_MODE:
        spec_kwargs["pipeline_mode"] = pl.Buffered(3)
    in_specs = [pl.BlockSpec((block_rows, _LANE), in_map, **spec_kwargs)]

    out_rows = 2 * group_rows
    min_out, max_out = pl.pallas_call(
        kernel,
        out_shape=(jax.ShapeDtypeStruct((out_rows, _LANE), jnp.float32),
                   jax.ShapeDtypeStruct((out_rows, _LANE), jnp.float32)),
        grid_spec=pltpu.PrefetchScalarGridSpec(
            num_scalar_prefetch=0,
            grid=grid,
            in_specs=in_specs,
            out_specs=[
                pl.BlockSpec((group_rows, _LANE), lambda c, i: (c, 0)),
                pl.BlockSpec((group_rows, _LANE), lambda c, i: (c, 0)),
            ],
            scratch_shapes=[pltpu.VMEM((group_rows, _LANE), acc_dtype),
                            pltpu.VMEM((group_rows, _LANE), acc_dtype)],
        ),
        compiler_params=pltpu.CompilerParams(
            dimension_semantics=("parallel", "arbitrary"),
            vmem_limit_bytes=_VMEM_LIMIT_BYTES,
        ),
        cost_estimate=pl.CostEstimate(
            flops=2 * rows * _LANE,
            transcendentals=0,
            bytes_accessed=rows * _LANE * itemsize + 2 * out_rows * _LANE * 4,
        ),
    )(slab)

    # Per-core partials initialised to +/-inf, so a core with only masked
    # (duplicate) work contributes identities and the combine stays correct.
    return jnp.min(min_out), jnp.max(max_out)


def _slab_min_max(slab):
    """Global (min, max) of a 2-D slab via a single pallas_call.  Returns f32."""
    rows, cols = slab.shape
    size_bytes = rows * cols * slab.dtype.itemsize
    if cols == _LANE and size_bytes > _DIRECT_LIMIT_BYTES:
        return _tiled_min_max(slab)
    return _direct_min_max(slab)


def observer_min_max(x):
    """Global (min, max) of `x`, computed in a Pallas TPU kernel.

    Equivalent to torch.min(input), torch.max(input) in ObserverBase.forward.
    """
    n = x.size
    if n == 0:
        raise ValueError("observer_min_max: empty input "
                         "(torch.min/max on an empty tensor also raises).")

    flat = x.reshape(-1)

    if n % _LANE == 0:
        # Free reshape to a lane-major 2-D slab; no padding copy needed.
        mn, mx = _slab_min_max(flat.reshape(n // _LANE, _LANE))
    elif n < _LANE:
        # Tiny ragged input: single (1, n) block (full-dim rule).
        mn, mx = _slab_min_max(flat.reshape(1, n))
    else:
        # Ragged numel: kernel over the 128-aligned prefix, <128-element tail
        # reduced outside.
        # TODO(synk): flat[:n_main] may materialize a prefix copy (up to ~2x
        # HBM for ragged sizes); a zero-copy fix needs memory_space=pl.ANY +
        # manual make_async_copy of 128-aligned chunks.
        n_main = (n // _LANE) * _LANE
        mn, mx = _slab_min_max(flat[:n_main].reshape(n_main // _LANE, _LANE))
        tail = flat[n_main:].astype(jnp.float32)
        mn = jnp.minimum(mn, jnp.min(tail))
        mx = jnp.maximum(mx, jnp.max(tail))

    # TODO(synk): f32 round-trip is lossy for integer inputs above 2^24.
    return mn.astype(x.dtype), mx.astype(x.dtype)


class ObserverBase:
    """JAX/Pallas analogue of the PyTorch ObserverBase module."""

    def __init__(self, q_level):
        self.q_level = q_level  # 'L' / 'C' — unused in the base forward
        self.min_val = None
        self.max_val = None

    def update_range(self, min_val, max_val):
        # TODO(synk): abstract (raises NotImplementedError) in the PyTorch
        # base class; store the values here so the script runs end-to-end.
        self.min_val = min_val
        self.max_val = max_val

    def forward(self, x):
        min_val, max_val = observer_min_max(x)
        self.update_range(min_val, max_val)
        return min_val, max_val

    __call__ = forward


def _check(x):
    obs = ObserverBase(q_level="L")
    mn, mx = obs(x)
    jax.block_until_ready((mn, mx))
    ref_min = jnp.min(x)
    ref_max = jnp.max(x)
    assert jnp.allclose(jnp.asarray(mn, jnp.float32),
                        jnp.asarray(ref_min, jnp.float32)), (mn, ref_min)
    assert jnp.allclose(jnp.asarray(mx, jnp.float32),
                        jnp.asarray(ref_max, jnp.float32)), (mx, ref_max)


if __name__ == "__main__":
    key = jax.random.PRNGKey(0)
    k1, k2, k3, k4, k5, k6 = jax.random.split(key, 6)

    # Primary case: NCHW, batch=2, channels=4, spatial=16x16 (direct path).
    x1 = jax.random.normal(k1, (2, 4, 16, 16), dtype=jnp.float32)
    _check(x1)

    # Tiled dual-core path, even block count, no mask (16 MiB f32).
    x2 = jax.random.normal(k2, (64, 512, 128), dtype=jnp.float32)
    _check(x2)

    # Tiled path with a ragged (masked) last block (~10 MiB f32).
    x3 = jax.random.normal(k3, (3, 7, 999, 128), dtype=jnp.float32)
    _check(x3)

    # Tiled path with odd block count -> clamped + fully-masked duplicate block.
    x4 = jax.random.normal(k4, (4, 10239, 128), dtype=jnp.float32)
    _check(x4)

    # Tiny ragged input (< 128 elements): (1, n) full-dim block.
    x5 = jax.random.normal(k5, (3, 5, 7), dtype=jnp.float32)
    _check(x5)

    # Ragged numel >= 128: aligned prefix via kernel + tiny host-side tail.
    x6 = jax.random.normal(k6, (2, 3, 100), dtype=jnp.float32)
    _check(x6)

    # bf16 tiled path: native bf16 accumulation into (16,128) scratch.
    x7 = x2.astype(jnp.bfloat16)
    _check(x7)

    # bf16 small input through the direct path.
    x8 = x1.astype(jnp.bfloat16)
    _check(x8)

    print("KERNEL_OK")
</pallas_src>

<mosaic_0001>
module attributes {stable_mosaic.version = 11 : i64} {
  func.func @_direct_kernel(%arg0: i32, %arg1: memref<16x128xf32, #tpu.memory_space<vmem>>, %arg2: memref<1x1xf32, #tpu.memory_space<vmem>>, %arg3: memref<1x1xf32, #tpu.memory_space<vmem>>) attributes {dimension_semantics = [#tpu.dimension_semantics<arbitrary>], iteration_bounds = array<i64: 1>, scalar_prefetch = 0 : i64, scratch_operands = 0 : i64, tpu.core_type = #tpu.core_type<tc>, window_params = [{pipeline_mode = #tpu.pipeline_mode<synchronous>, transform_indices = @transform_0, window_bounds = array<i64: 16, 128>}, {pipeline_mode = #tpu.pipeline_mode<synchronous>, transform_indices = @transform_1, window_bounds = array<i64: 1, 1>}, {pipeline_mode = #tpu.pipeline_mode<synchronous>, transform_indices = @transform_2, window_bounds = array<i64: 1, 1>}]} {
    %c0 = arith.constant 0 : index
    %c0_0 = arith.constant 0 : index
    %0 = vector.load %arg1[%c0, %c0_0] : memref<16x128xf32, #tpu.memory_space<vmem>>, vector<16x128xf32>
    %1 = vector.shape_cast %0 : vector<16x128xf32> to vector<1x16x128xf32>
    %cst = arith.constant dense<0x7F800000> : vector<1xf32>
    %2 = vector.multi_reduction <minimumf>, %1, %cst [1, 2] : vector<1x16x128xf32> to vector<1xf32>
    %3 = vector.shape_cast %2 : vector<1xf32> to vector<1x1x1xf32>
    %4 = vector.extract %3[0, 0, 0] : f32 from vector<1x1x1xf32>
    %5 = vector.broadcast %4 : f32 to vector<1x1xf32>
    %c0_1 = arith.constant 0 : index
    %c0_2 = arith.constant 0 : index
    %6 = vector.load %arg2[%c0_1, %c0_2] : memref<1x1xf32, #tpu.memory_space<vmem>>, vector<1x1xf32>
    tpu.vector_store %arg2[%c0_1, %c0_2], %5 {strides = array<i32>} : memref<1x1xf32, #tpu.memory_space<vmem>>, vector<1x1xf32>,
    %7 = vector.shape_cast %0 : vector<16x128xf32> to vector<1x16x128xf32>
    %cst_3 = arith.constant dense<0xFF800000> : vector<1xf32>
    %8 = vector.multi_reduction <maximumf>, %7, %cst_3 [1, 2] : vector<1x16x128xf32> to vector<1xf32>
    %9 = vector.shape_cast %8 : vector<1xf32> to vector<1x1x1xf32>
    %10 = vector.extract %9[0, 0, 0] : f32 from vector<1x1x1xf32>
    %11 = vector.broadcast %10 : f32 to vector<1x1xf32>
    %c0_4 = arith.constant 0 : index
    %c0_5 = arith.constant 0 : index
    %12 = vector.load %arg3[%c0_4, %c0_5] : memref<1x1xf32, #tpu.memory_space<vmem>>, vector<1x1xf32>
    tpu.vector_store %arg3[%c0_4, %c0_5], %11 {strides = array<i32>} : memref<1x1xf32, #tpu.memory_space<vmem>>, vector<1x1xf32>,
    return
  }
  func.func @transform_0(%arg0: i32) -> (i32, i32) {
    %c0_i32 = arith.constant 0 : i32
    %c0_i32_0 = arith.constant 0 : i32
    %c0_i32_1 = arith.constant 0 : i32
    return %c0_i32, %c0_i32_0 : i32, i32
  }
  func.func @transform_1(%arg0: i32) -> (i32, i32) {
    %c0_i32 = arith.constant 0 : i32
    %c0_i32_0 = arith.constant 0 : i32
    %c0_i32_1 = arith.constant 0 : i32
    return %c0_i32, %c0_i32_0 : i32, i32
  }
  func.func @transform_2(%arg0: i32) -> (i32, i32) {
    %c0_i32 = arith.constant 0 : i32
    %c0_i32_0 = arith.constant 0 : i32
    %c0_i32_1 = arith.constant 0 : i32
    return %c0_i32, %c0_i32_0 : i32, i32
  }
}

</mosaic_0001>

<bundles_post_ra>
// kernel: tpu_custom_call.1
= control target key start
LH: loop header
LB: loop body
LE: loop exit
PB: predicated region body
PF: predicated region fallthrough
CT: control target
= control target key end

     0   :  { %8 = vsyncpa [#allocation3], 0  ;;  %s188_s0 = inlined_call_operand.hbm [shape: f32[16,128], index: 0, kind: input, shape index: {}]   ;;  %s189_s1 = inlined_call_operand.hbm [shape: f32[1,1], index: 1, kind: output, shape index: {0}]   ;;  %s190_s2 = inlined_call_operand.hbm [shape: f32[1,1], index: 2, kind: output, shape index: {1}]  }
   0x1   :  { %9 = vsyncpa [#allocation4], 0 }
   0x2   :  { %10 = vsyncpa [#allocation7], 0  ;;  %s157_s9 = smov [#allocation2]  }
   0x3   :  { %s16_s10 = sshll.u32 %s157_s9, 4  ;;  %s17_s10 = int_to_ptr.vmem [resolvable:$true] %s16_s10 }
   0x4   :  { %s99_s11 = scalar_lea.vmem %s17_s10, 256  ;;  %p104_p1 = scmp.lt.s32.totalorder %s17_s10, %s17_s10 }
   0x5   :  { %p100_p0 = scmp.ne.s32.totalorder %s17_s10, %s99_s11  ;;  %p105_p2 = scmp.lt.s32.totalorder %s99_s11, %s99_s11 }
   0x7   :  { %p106_p3 = por %p105_p2, %p104_p1 }
   0x9   :  { %p107_p4 = pnand %p106_p3, %p100_p0 }
   0xb   :  { %110 = shalt.err (!%p107_p4)
}
   0xc   :  { %s158_s12 = smov 128   ;;  %s159_s13 = smov 8  }
   0xd   :  { %22 = dma.hbm_to_vmem [thread:$0]  %s188_s0, 256, %s17_s10, [#allocation3], %s158_s12, %s158_s12, %s159_s13  }
   0xe   :  { %151 = dma.done.wait [#allocation3], 256  }
   0xf   :  { %152 = vsyncadd [#allocation3], 4294967040  ;;  %v26_v0 = vld [vmem:[#allocation2] sm:$0xff]  ;;  %v27_v1 = vld [vmem:[#allocation2 + $0x8] sm:$0xff]  ;;  %s160_s0 = smov [#allocation5]   ;;  %vm39_vm0 = vcmask 0  }
  0x10   :  { %v28_v2 = vmin.f32 %v26_v0, %v27_v1  ;;  %v41_v3 = vmax.f32 %v26_v0, %v27_v1  ;;  %s59_s16 = sshll.u32 %s160_s0, 4  ;;  %s161_s18 = smov [#allocation6]   ;;  %s60_s16 = int_to_ptr.vmem [resolvable:$true] %s59_s16 }
  0x11   :  { %s69_s19 = sshll.u32 %s161_s18, 4  ;;  %s111_s20 = scalar_lea.vmem %s60_s16, 16  ;;  %s70_s19 = int_to_ptr.vmem [resolvable:$true] %s69_s19 }
  0x12   :  { %29 = vmin.xlane.f32.xlu0 %v28_v2  ;;  %p112_p5 = scmp.ne.s32.totalorder %s60_s16, %s111_s20  ;;  %s115_s21 = scalar_lea.vmem %s60_s16, 32 }
  0x13   :  { %p116_p6 = scmp.lt.s32.totalorder %s60_s16, %s60_s16  ;;  %p117_p7 = scmp.lt.s32.totalorder %s115_s21, %s111_s20 }
  0x15   :  { %p118_p8 = por %p117_p7, %p116_p6 }
  0x16   :  { %42 = vmax.xlane.f32.xlu0 %v41_v3 }
  0x17   :  { %p119_p9 = pnand %p118_p8, %p112_p5 }
  0x9b   :  { %v30_v4 = vpop.xlane.xlu0 %29 }
  0x9c   :  { %v31_v5 = vrot.slane %v30_v4, 4 }
  0x9e   :  { %v32_v6 = vmin.f32 %v30_v4, %v31_v5 }
  0x9f   :  { %v43_v7 = vpop.xlane.xlu0 %42 }
  0xa0   :  { %v33_v8 = vrot.slane %v32_v6, 2  ;;  %v44_v9 = vrot.slane %v43_v7, 4 }
  0xa2   :  { %v45_v10 = vmax.f32 %v43_v7, %v44_v9  ;;  %v34_v11 = vmin.f32 %v32_v6, %v33_v8 }
  0xa4   :  { %v46_v12 = vrot.slane %v45_v10, 2  ;;  %v35_v13 = vrot.slane %v34_v11, 1 }
  0xa6   :  { %v47_v14 = vmax.f32 %v45_v10, %v46_v12  ;;  %v36_v15 = vmin.f32 %v34_v11, %v35_v13 }
  0xa8   :  { %82 = vpush %v36_v15  ;;  %v48_v16 = vrot.slane %v47_v14, 1 }
  0xaa   :  { %v49_v17 = vmax.f32 %v47_v14, %v48_v16 }
  0xac   :  { %84 = vpush %v49_v17 }
  0xd9   :  { %s83_s17 = spop %82 }
  0xda   :  { %v38_v18 = vstv %s83_s17 }
  0xdb   :  { %40 = vst.msk [vmem:[#allocation5] sm:$0x1] %vm39_vm0, %v38_v18 }
  0xdc   :  { %122 = shalt.err (!%p119_p9)
}
  0xdd   :  { %62 = dma.vmem_to_hbm [thread:$0]  %s60_s16, 16, %s189_s1, [#allocation4]  }
  0xde   :  { %s85_s24 = spop %84  ;;  %s131_s25 = scalar_lea.vmem %s70_s19, 16 }
  0xdf   :  { %v51_v19 = vstv %s85_s24  ;;  %p132_p10 = scmp.ne.s32.totalorder %s70_s19, %s131_s25  ;;  %s135_s26 = scalar_lea.vmem %s70_s19, 32 }
  0xe0   :  { %52 = vst.msk [vmem:[#allocation6] sm:$0x1] %vm39_vm0, %v51_v19  ;;  %p136_p11 = scmp.lt.s32.totalorder %s70_s19, %s70_s19  ;;  %p137_p12 = scmp.lt.s32.totalorder %s135_s26, %s131_s25 }
  0xe2   :  { %p138_p13 = por %p137_p12, %p136_p11 }
  0xe4   :  { %p139_p0 = pnand %p138_p13, %p132_p10 }
  0xe6   :  { %142 = shalt.err (!%p139_p0)
}
  0xe7   :  { %72 = dma.vmem_to_hbm [thread:$0]  %s70_s19, 16, %s190_s2, [#allocation7]  }
  0xe8   :  { %153 = dma.done.wait [#allocation4], 16  }
  0xe9   :  { %154 = vsyncadd [#allocation4], 4294967280 }
  0xea   :  { %155 = dma.done.wait [#allocation7], 16  }
  0xeb   :  { %156 = vsyncadd [#allocation7], 4294967280 }
  0xec   :  { %79 = vsyncpa [#allocation3], 1 }
  0xed   :  { %80 = vsyncpa [#allocation4], 1 }
  0xee   :  { %81 = vsyncpa [#allocation7], 1 }

</bundles_post_ra>
